<compile_context>
chip_gen: v7x
topology: tpu7x:2x2x1
jax: 0.10.0
libtpu: 0.0.40
codegen_flags: <defaults>
</compile_context>

<pallas_src>
import functools

import numpy as np
import jax
import jax.numpy as jnp
from jax.experimental import pallas as pl
from jax.experimental.pallas import tpu as pltpu


def lstm_kernel(x_ref, w_ih_ref, w_hh_ref, b_ref, w_out_ref, b_out_ref,
                out_ref, gi_ref, *, seq_len, batch_tile, hidden_size,
                activation):
    """Fused single-layer LSTM + output Linear + activation (one batch chunk).

    x_ref     : (S, BB, D_in)  VMEM, bf16, time-major within the chunk
    w_ih_ref  : (D_in, 4H)     VMEM, bf16, gate columns ordered [i|f|o|g]
    w_hh_ref  : (H, 4H)        VMEM, bf16, gate columns ordered [i|f|o|g]
    b_ref     : (1, 4H)        VMEM, f32  (b_ih + b_hh, reordered)
    w_out_ref : (H, O_pad)     VMEM, bf16 (zero-padded to 128 lanes)
    b_out_ref : (1, O_pad)     VMEM, f32
    out_ref   : (S, BB, O_pad) VMEM, f32
    gi_ref    : (S, BB, 4H)    VMEM scratch, f32 — input-side preactivations
    """
    S, BB, H = seq_len, batch_tile, hidden_size
    H4 = 4 * H

    # ---- Hoisted input projection for every timestep: one bf16 matmul -------
    # (S*BB, D) x (D, 4H) with f32 accumulation; bias folded in. The reshape
    # (S*BB, 4H) <-> (S, BB, 4H) is a free sublane split (BB == 8).
    x = x_ref[...].reshape(S * BB, -1)                               # bf16
    gi = jnp.dot(x, w_ih_ref[...],
                 preferred_element_type=jnp.float32) + b_ref[...]    # f32
    gi_ref[...] = gi.reshape(S, BB, H4)

    # Loop-invariant recurrent weight: load once (bf16).
    w_hh = w_hh_ref[...]                                             # (H, 4H)

    h = jnp.zeros((BB, H), jnp.float32)
    c = jnp.zeros((BB, H), jnp.float32)
    hs = []

    # ---- Recurrence: fully unrolled (S static), tile-aligned slices ---------
    for t in range(S):
        gates = gi_ref[t] + jnp.dot(h.astype(jnp.bfloat16), w_hh,
                                    preferred_element_type=jnp.float32)  # (BB,4H) f32
        # Columns are [i | f | o | g]: one contiguous sigmoid, one tanh.
        sig = jax.nn.sigmoid(gates[:, :3 * H])
        i_g = sig[:, 0 * H:1 * H]
        f_g = sig[:, 1 * H:2 * H]
        o_g = sig[:, 2 * H:3 * H]
        g_g = jnp.tanh(gates[:, 3 * H:])

        c = f_g * c + i_g * g_g
        h = o_g * jnp.tanh(c)
        hs.append(h)                       # keep in vregs; no per-step store

    # ---- Hoisted output projection + activation, one lane-dense store -------
    h_all = jnp.concatenate(hs, axis=0).astype(jnp.bfloat16)         # (S*BB, H)
    y = jnp.dot(h_all, w_out_ref[...],
                preferred_element_type=jnp.float32) + b_out_ref[...]  # (S*BB, O_pad)
    if activation == "Tanh":
        y = jnp.tanh(y)
    elif activation == "ReLU":
        y = jnp.maximum(y, 0.0)
    elif activation == "Sigmoid":
        y = jax.nn.sigmoid(y)
    else:
        raise ValueError(f"unsupported activation {activation}")

    out_ref[...] = y.reshape(S, BB, -1)


def lstm_forward(features, params, *, hidden_size, activation="Tanh"):
    """features: (B, S, D_in) batch_first, float32. Returns (B, S, O)."""
    B, S, D = features.shape
    H = hidden_size
    H4 = 4 * H
    O = params["w_out"].shape[1]

    BB = 8                                   # sublane tile per batch chunk
    LANE = 128
    n_chunks = pl.cdiv(B, BB)
    B_pad = n_chunks * BB
    O_pad = ((O + LANE - 1) // LANE) * LANE  # lane-dense output store
    # TODO(synk): at scale pack multiple (S,B) rows per 128-lane store instead
    #             of padding O, to avoid the extra HBM writeback.

    # Gate column reorder [i,f,g,o] -> [i,f,o,g] (wrapper-side, off hot path).
    perm = np.r_[0:2 * H, 3 * H:4 * H, 2 * H:3 * H]

    # Layout glue: pad batch to a multiple of 8, time-major within each chunk.
    x = jnp.zeros((B_pad, S, D), features.dtype).at[:B].set(features)
    x = x.reshape(n_chunks, BB, S, D).transpose(0, 2, 1, 3).astype(jnp.bfloat16)

    w_ih = params["w_ih"][:, perm].astype(jnp.bfloat16)              # (D, 4H)
    w_hh = params["w_hh"][:, perm].astype(jnp.bfloat16)              # (H, 4H)
    b = params["b"][:, perm]                                         # (1, 4H) f32
    w_out = jnp.zeros((H, O_pad), jnp.float32).at[:, :O].set(
        params["w_out"]).astype(jnp.bfloat16)
    b_out = jnp.zeros((1, O_pad), jnp.float32).at[:, :O].set(params["b_out"])

    kernel = functools.partial(lstm_kernel, seq_len=S, batch_tile=BB,
                               hidden_size=H, activation=activation)

    out = pl.pallas_call(
        kernel,
        out_shape=jax.ShapeDtypeStruct((n_chunks, S, BB, O_pad), jnp.float32),
        grid=(n_chunks,),
        in_specs=[
            pl.BlockSpec((None, S, BB, D), lambda bi: (bi, 0, 0, 0)),
            pl.BlockSpec((D, H4), lambda bi: (0, 0)),
            pl.BlockSpec((H, H4), lambda bi: (0, 0)),
            pl.BlockSpec((1, H4), lambda bi: (0, 0)),
            pl.BlockSpec((H, O_pad), lambda bi: (0, 0)),
            pl.BlockSpec((1, O_pad), lambda bi: (0, 0)),
        ],
        out_specs=pl.BlockSpec((None, S, BB, O_pad), lambda bi: (bi, 0, 0, 0)),
        scratch_shapes=[pltpu.VMEM((S, BB, H4), jnp.float32)],
        compiler_params=pltpu.CompilerParams(
            dimension_semantics=("parallel",),      # independent batch chunks
            vmem_limit_bytes=32 * 1024 * 1024),
    )(x, w_ih, w_hh, b, w_out, b_out)

    # (chunks, S, BB, O_pad) -> (B, S, O)
    out = out.transpose(0, 2, 1, 3).reshape(B_pad, S, O_pad)
    return out[:B, :, :O]


def init_params(key, input_size, hidden_size, output_size):
    """Deterministic init mirroring the module's init_weights:
    xavier_uniform for weight_ih / scaling weight, orthogonal for weight_hh,
    zeros for all biases. Weights stored pre-transposed (in, out), gate order
    [i, f, g, o] (PyTorch convention)."""
    k1, k2, k3 = jax.random.split(key, 3)
    H4 = 4 * hidden_size

    a_ih = (6.0 / (H4 + input_size)) ** 0.5
    w_ih = jax.random.uniform(k1, (input_size, H4), jnp.float32, -a_ih, a_ih)

    m = jax.random.normal(k2, (H4, hidden_size), jnp.float32)
    q, r = jnp.linalg.qr(m)
    q = q * jnp.sign(jnp.diagonal(r))[None, :]
    w_hh = q.T                                                       # (H, 4H)

    a_out = (6.0 / (output_size + hidden_size)) ** 0.5
    w_out = jax.random.uniform(k3, (hidden_size, output_size), jnp.float32,
                               -a_out, a_out)

    return {
        "w_ih": w_ih,
        "w_hh": w_hh,
        "b": jnp.zeros((1, H4), jnp.float32),                        # b_ih + b_hh
        "w_out": w_out,
        "b_out": jnp.zeros((1, output_size), jnp.float32),
    }


def reference_forward(features, params, *, hidden_size, activation="Tanh"):
    """Pure-JAX reference (PyTorch LSTM semantics), using the same bf16 matmul
    operands / f32 accumulation as the kernel for apples-to-apples comparison."""
    H = hidden_size
    B = features.shape[0]
    w_ih = params["w_ih"].astype(jnp.bfloat16)
    w_hh = params["w_hh"].astype(jnp.bfloat16)
    w_out = params["w_out"].astype(jnp.bfloat16)

    def step(carry, x_t):
        h, c = carry
        gates = (jnp.dot(x_t.astype(jnp.bfloat16), w_ih,
                         preferred_element_type=jnp.float32)
                 + jnp.dot(h.astype(jnp.bfloat16), w_hh,
                           preferred_element_type=jnp.float32)
                 + params["b"])
        i = jax.nn.sigmoid(gates[:, 0 * H:1 * H])
        f = jax.nn.sigmoid(gates[:, 1 * H:2 * H])
        g = jnp.tanh(gates[:, 2 * H:3 * H])
        o = jax.nn.sigmoid(gates[:, 3 * H:4 * H])
        c = f * c + i * g
        h = o * jnp.tanh(c)
        return (h, c), h

    x_tmajor = jnp.transpose(features, (1, 0, 2))
    init = (jnp.zeros((B, H), jnp.float32), jnp.zeros((B, H), jnp.float32))
    _, hs = jax.lax.scan(step, init, x_tmajor)                       # (S, B, H)
    y = jnp.dot(hs.astype(jnp.bfloat16), w_out,
                preferred_element_type=jnp.float32) + params["b_out"]
    if activation == "Tanh":
        y = jnp.tanh(y)
    elif activation == "ReLU":
        y = jnp.maximum(y, 0.0)
    elif activation == "Sigmoid":
        y = jax.nn.sigmoid(y)
    else:
        raise ValueError(f"unsupported activation {activation}")
    return jnp.transpose(y, (1, 0, 2))


if __name__ == "__main__":
    # config['model']['LSTM'] equivalent (small synthetic sizes):
    input_size, hidden_size, output_size = 8, 32, 4
    num_layers, bidirectional, activation = 1, False, "Tanh"

    batch, seq = 2, 8

    key = jax.random.PRNGKey(0)
    k_param, k_data = jax.random.split(key)
    params = init_params(k_param, input_size, hidden_size, output_size)
    features = jax.random.normal(k_data, (batch, seq, input_size), jnp.float32)

    out = lstm_forward(features, params,
                       hidden_size=hidden_size, activation=activation)
    out = jax.block_until_ready(out)

    ref = reference_forward(features, params,
                            hidden_size=hidden_size, activation=activation)
    assert out.shape == (batch, seq, output_size)
    assert jnp.allclose(out, ref, atol=1e-2, rtol=1e-2), "mismatch vs JAX reference"

    print("KERNEL_OK")
</pallas_src>

<mosaic_0001>
module attributes {stable_mosaic.version = 11 : i64} {
  func.func @lstm_kernel(%arg0: i32, %arg1: memref<1x8x8x8xbf16, #tpu.memory_space<vmem>>, %arg2: memref<8x128xbf16, #tpu.memory_space<vmem>>, %arg3: memref<32x128xbf16, #tpu.memory_space<vmem>>, %arg4: memref<1x128xf32, #tpu.memory_space<vmem>>, %arg5: memref<32x128xbf16, #tpu.memory_space<vmem>>, %arg6: memref<1x128xf32, #tpu.memory_space<vmem>>, %arg7: memref<1x8x8x128xf32, #tpu.memory_space<vmem>>, %arg8: memref<8x8x128xf32, #tpu.memory_space<vmem>>) attributes {dimension_semantics = [#tpu.dimension_semantics<parallel>], iteration_bounds = array<i64: 1>, scalar_prefetch = 0 : i64, scratch_operands = 1 : i64, tpu.core_type = #tpu.core_type<tc>, window_params = [{transform_indices = @transform_0, window_bounds = array<i64: 1, 8, 8, 8>}, {pipeline_mode = #tpu.pipeline_mode<synchronous>, transform_indices = @transform_1, window_bounds = array<i64: 8, 128>}, {pipeline_mode = #tpu.pipeline_mode<synchronous>, transform_indices = @transform_2, window_bounds = array<i64: 32, 128>}, {pipeline_mode = #tpu.pipeline_mode<synchronous>, transform_indices = @transform_3, window_bounds = array<i64: 1, 128>}, {pipeline_mode = #tpu.pipeline_mode<synchronous>, transform_indices = @transform_4, window_bounds = array<i64: 32, 128>}, {pipeline_mode = #tpu.pipeline_mode<synchronous>, transform_indices = @transform_5, window_bounds = array<i64: 1, 128>}, {transform_indices = @transform_6, window_bounds = array<i64: 1, 8, 8, 128>}]} {
    %c0 = arith.constant 0 : index
    %c0_0 = arith.constant 0 : index
    %c0_1 = arith.constant 0 : index
    %c0_2 = arith.constant 0 : index
    %0 = vector.load %arg1[%c0, %c0_0, %c0_1, %c0_2] : memref<1x8x8x8xbf16, #tpu.memory_space<vmem>>, vector<1x8x8x8xbf16>
    %1 = vector.shape_cast %0 : vector<1x8x8x8xbf16> to vector<8x8x8xbf16>
    %2 = vector.shape_cast %1 : vector<8x8x8xbf16> to vector<64x8xbf16>
    %c0_3 = arith.constant 0 : index
    %c0_4 = arith.constant 0 : index
    %3 = vector.load %arg2[%c0_3, %c0_4] : memref<8x128xbf16, #tpu.memory_space<vmem>>, vector<8x128xbf16>
    %cst = arith.constant dense<0.000000e+00> : vector<64x128xf32>
    %4 = tpu.matmul %2, %3, %cst {dimension_numbers = #tpu.dot_dimension_numbers<[1], [0], [0], [1], [0, 0, 1, 1], [], []>} : vector<64x8xbf16>, vector<8x128xbf16>, vector<64x128xf32> -> vector<64x128xf32>
    %c0_5 = arith.constant 0 : index
    %c0_6 = arith.constant 0 : index
    %5 = vector.load %arg4[%c0_5, %c0_6] : memref<1x128xf32, #tpu.memory_space<vmem>>, vector<1x128xf32>
    %6 = vector.broadcast %5 : vector<1x128xf32> to vector<64x128xf32>
    %7 = arith.addf %4, %6 : vector<64x128xf32>
    %8 = vector.shape_cast %7 : vector<64x128xf32> to vector<8x8x128xf32>
    %c0_7 = arith.constant 0 : index
    %c0_8 = arith.constant 0 : index
    %c0_9 = arith.constant 0 : index
    %9 = vector.load %arg8[%c0_7, %c0_8, %c0_9] : memref<8x8x128xf32, #tpu.memory_space<vmem>>, vector<8x8x128xf32>
    tpu.vector_store %arg8[%c0_7, %c0_8, %c0_9], %8 {strides = array<i32>} : memref<8x8x128xf32, #tpu.memory_space<vmem>>, vector<8x8x128xf32>,
    %c0_10 = arith.constant 0 : index
    %c0_11 = arith.constant 0 : index
    %10 = vector.load %arg3[%c0_10, %c0_11] : memref<32x128xbf16, #tpu.memory_space<vmem>>, vector<32x128xbf16>
    %cst_12 = arith.constant 0.000000e+00 : f32
    %11 = vector.broadcast %cst_12 : f32 to vector<8x32xf32>
    %cst_13 = arith.constant 0.000000e+00 : f32
    %12 = vector.broadcast %cst_13 : f32 to vector<8x32xf32>
    %c0_14 = arith.constant 0 : index
    %c0_15 = arith.constant 0 : index
    %c0_16 = arith.constant 0 : index
    %13 = vector.load %arg8[%c0_14, %c0_15, %c0_16] : memref<8x8x128xf32, #tpu.memory_space<vmem>>, vector<1x8x128xf32>
    %14 = vector.shape_cast %13 : vector<1x8x128xf32> to vector<8x128xf32>
    %15 = arith.truncf %11 : vector<8x32xf32> to vector<8x32xbf16>
    %cst_17 = arith.constant dense<0.000000e+00> : vector<8x128xf32>
    %16 = tpu.matmul %15, %10, %cst_17 {dimension_numbers = #tpu.dot_dimension_numbers<[1], [0], [0], [1], [0, 0, 1, 1], [], []>} : vector<8x32xbf16>, vector<32x128xbf16>, vector<8x128xf32> -> vector<8x128xf32>
    %17 = arith.addf %14, %16 : vector<8x128xf32>
    %18 = vector.extract_strided_slice %17 {offsets = [0, 0], sizes = [8, 96], strides = [1, 1]} : vector<8x128xf32> to vector<8x96xf32>
    %19 = arith.negf %18 : vector<8x96xf32>
    %20 = math.exp %19 : vector<8x96xf32>
    %cst_18 = arith.constant 1.000000e+00 : f32
    %21 = vector.broadcast %cst_18 : f32 to vector<8x96xf32>
    %22 = arith.addf %21, %20 : vector<8x96xf32>
    %23 = arith.divf %21, %22 : vector<8x96xf32>
    %24 = vector.extract_strided_slice %23 {offsets = [0, 0], sizes = [8, 32], strides = [1, 1]} : vector<8x96xf32> to vector<8x32xf32>
    %25 = vector.extract_strided_slice %23 {offsets = [0, 32], sizes = [8, 32], strides = [1, 1]} : vector<8x96xf32> to vector<8x32xf32>
    %26 = vector.extract_strided_slice %23 {offsets = [0, 64], sizes = [8, 32], strides = [1, 1]} : vector<8x96xf32> to vector<8x32xf32>
    %27 = vector.extract_strided_slice %17 {offsets = [0, 96], sizes = [8, 32], strides = [1, 1]} : vector<8x128xf32> to vector<8x32xf32>
    %28 = math.tanh %27 : vector<8x32xf32>
    %29 = arith.mulf %25, %12 : vector<8x32xf32>
    %30 = arith.mulf %24, %28 : vector<8x32xf32>
    %31 = arith.addf %29, %30 : vector<8x32xf32>
    %32 = math.tanh %31 : vector<8x32xf32>
    %33 = arith.mulf %26, %32 : vector<8x32xf32>
    %c1 = arith.constant 1 : index
    %c0_19 = arith.constant 0 : index
    %c0_20 = arith.constant 0 : index
    %34 = vector.load %arg8[%c1, %c0_19, %c0_20] : memref<8x8x128xf32, #tpu.memory_space<vmem>>, vector<1x8x128xf32>
    %35 = vector.shape_cast %34 : vector<1x8x128xf32> to vector<8x128xf32>
    %36 = arith.truncf %33 : vector<8x32xf32> to vector<8x32xbf16>
    %cst_21 = arith.constant dense<0.000000e+00> : vector<8x128xf32>
    %37 = tpu.matmul %36, %10, %cst_21 {dimension_numbers = #tpu.dot_dimension_numbers<[1], [0], [0], [1], [0, 0, 1, 1], [], []>} : vector<8x32xbf16>, vector<32x128xbf16>, vector<8x128xf32> -> vector<8x128xf32>
    %38 = arith.addf %35, %37 : vector<8x128xf32>
    %39 = vector.extract_strided_slice %38 {offsets = [0, 0], sizes = [8, 96], strides = [1, 1]} : vector<8x128xf32> to vector<8x96xf32>
    %40 = arith.negf %39 : vector<8x96xf32>
    %41 = math.exp %40 : vector<8x96xf32>
    %cst_22 = arith.constant 1.000000e+00 : f32
    %42 = vector.broadcast %cst_22 : f32 to vector<8x96xf32>
    %43 = arith.addf %42, %41 : vector<8x96xf32>
    %44 = arith.divf %42, %43 : vector<8x96xf32>
    %45 = vector.extract_strided_slice %44 {offsets = [0, 0], sizes = [8, 32], strides = [1, 1]} : vector<8x96xf32> to vector<8x32xf32>
    %46 = vector.extract_strided_slice %44 {offsets = [0, 32], sizes = [8, 32], strides = [1, 1]} : vector<8x96xf32> to vector<8x32xf32>
    %47 = vector.extract_strided_slice %44 {offsets = [0, 64], sizes = [8, 32], strides = [1, 1]} : vector<8x96xf32> to vector<8x32xf32>
    %48 = vector.extract_strided_slice %38 {offsets = [0, 96], sizes = [8, 32], strides = [1, 1]} : vector<8x128xf32> to vector<8x32xf32>
    %49 = math.tanh %48 : vector<8x32xf32>
    %50 = arith.mulf %46, %31 : vector<8x32xf32>
    %51 = arith.mulf %45, %49 : vector<8x32xf32>
    %52 = arith.addf %50, %51 : vector<8x32xf32>
    %53 = math.tanh %52 : vector<8x32xf32>
    %54 = arith.mulf %47, %53 : vector<8x32xf32>
    %c2 = arith.constant 2 : index
    %c0_23 = arith.constant 0 : index
    %c0_24 = arith.constant 0 : index
    %55 = vector.load %arg8[%c2, %c0_23, %c0_24] : memref<8x8x128xf32, #tpu.memory_space<vmem>>, vector<1x8x128xf32>
    %56 = vector.shape_cast %55 : vector<1x8x128xf32> to vector<8x128xf32>
    %57 = arith.truncf %54 : vector<8x32xf32> to vector<8x32xbf16>
    %cst_25 = arith.constant dense<0.000000e+00> : vector<8x128xf32>
    %58 = tpu.matmul %57, %10, %cst_25 {dimension_numbers = #tpu.dot_dimension_numbers<[1], [0], [0], [1], [0, 0, 1, 1], [], []>} : vector<8x32xbf16>, vector<32x128xbf16>, vector<8x128xf32> -> vector<8x128xf32>
    %59 = arith.addf %56, %58 : vector<8x128xf32>
    %60 = vector.extract_strided_slice %59 {offsets = [0, 0], sizes = [8, 96], strides = [1, 1]} : vector<8x128xf32> to vector<8x96xf32>
    %61 = arith.negf %60 : vector<8x96xf32>
    %62 = math.exp %61 : vector<8x96xf32>
    %cst_26 = arith.constant 1.000000e+00 : f32
    %63 = vector.broadcast %cst_26 : f32 to vector<8x96xf32>
    %64 = arith.addf %63, %62 : vector<8x96xf32>
    %65 = arith.divf %63, %64 : vector<8x96xf32>
    %66 = vector.extract_strided_slice %65 {offsets = [0, 0], sizes = [8, 32], strides = [1, 1]} : vector<8x96xf32> to vector<8x32xf32>
    %67 = vector.extract_strided_slice %65 {offsets = [0, 32], sizes = [8, 32], strides = [1, 1]} : vector<8x96xf32> to vector<8x32xf32>
    %68 = vector.extract_strided_slice %65 {offsets = [0, 64], sizes = [8, 32], strides = [1, 1]} : vector<8x96xf32> to vector<8x32xf32>
    %69 = vector.extract_strided_slice %59 {offsets = [0, 96], sizes = [8, 32], strides = [1, 1]} : vector<8x128xf32> to vector<8x32xf32>
    %70 = math.tanh %69 : vector<8x32xf32>
    %71 = arith.mulf %67, %52 : vector<8x32xf32>
    %72 = arith.mulf %66, %70 : vector<8x32xf32>
    %73 = arith.addf %71, %72 : vector<8x32xf32>
    %74 = math.tanh %73 : vector<8x32xf32>
    %75 = arith.mulf %68, %74 : vector<8x32xf32>
    %c3 = arith.constant 3 : index
    %c0_27 = arith.constant 0 : index
    %c0_28 = arith.constant 0 : index
    %76 = vector.load %arg8[%c3, %c0_27, %c0_28] : memref<8x8x128xf32, #tpu.memory_space<vmem>>, vector<1x8x128xf32>
    %77 = vector.shape_cast %76 : vector<1x8x128xf32> to vector<8x128xf32>
    %78 = arith.truncf %75 : vector<8x32xf32> to vector<8x32xbf16>
    %cst_29 = arith.constant dense<0.000000e+00> : vector<8x128xf32>
    %79 = tpu.matmul %78, %10, %cst_29 {dimension_numbers = #tpu.dot_dimension_numbers<[1], [0], [0], [1], [0, 0, 1, 1], [], []>} : vector<8x32xbf16>, vector<32x128xbf16>, vector<8x128xf32> -> vector<8x128xf32>
    %80 = arith.addf %77, %79 : vector<8x128xf32>
    %81 = vector.extract_strided_slice %80 {offsets = [0, 0], sizes = [8, 96], strides = [1, 1]} : vector<8x128xf32> to vector<8x96xf32>
    %82 = arith.negf %81 : vector<8x96xf32>
    %83 = math.exp %82 : vector<8x96xf32>
    %cst_30 = arith.constant 1.000000e+00 : f32
    %84 = vector.broadcast %cst_30 : f32 to vector<8x96xf32>
    %85 = arith.addf %84, %83 : vector<8x96xf32>
    %86 = arith.divf %84, %85 : vector<8x96xf32>
    %87 = vector.extract_strided_slice %86 {offsets = [0, 0], sizes = [8, 32], strides = [1, 1]} : vector<8x96xf32> to vector<8x32xf32>
    %88 = vector.extract_strided_slice %86 {offsets = [0, 32], sizes = [8, 32], strides = [1, 1]} : vector<8x96xf32> to vector<8x32xf32>
    %89 = vector.extract_strided_slice %86 {offsets = [0, 64], sizes = [8, 32], strides = [1, 1]} : vector<8x96xf32> to vector<8x32xf32>
    %90 = vector.extract_strided_slice %80 {offsets = [0, 96], sizes = [8, 32], strides = [1, 1]} : vector<8x128xf32> to vector<8x32xf32>
    %91 = math.tanh %90 : vector<8x32xf32>
    %92 = arith.mulf %88, %73 : vector<8x32xf32>
    %93 = arith.mulf %87, %91 : vector<8x32xf32>
    %94 = arith.addf %92, %93 : vector<8x32xf32>
    %95 = math.tanh %94 : vector<8x32xf32>
    %96 = arith.mulf %89, %95 : vector<8x32xf32>
    %c4 = arith.constant 4 : index
    %c0_31 = arith.constant 0 : index
    %c0_32 = arith.constant 0 : index
    %97 = vector.load %arg8[%c4, %c0_31, %c0_32] : memref<8x8x128xf32, #tpu.memory_space<vmem>>, vector<1x8x128xf32>
    %98 = vector.shape_cast %97 : vector<1x8x128xf32> to vector<8x128xf32>
    %99 = arith.truncf %96 : vector<8x32xf32> to vector<8x32xbf16>
    %cst_33 = arith.constant dense<0.000000e+00> : vector<8x128xf32>
    %100 = tpu.matmul %99, %10, %cst_33 {dimension_numbers = #tpu.dot_dimension_numbers<[1], [0], [0], [1], [0, 0, 1, 1], [], []>} : vector<8x32xbf16>, vector<32x128xbf16>, vector<8x128xf32> -> vector<8x128xf32>
    %101 = arith.addf %98, %100 : vector<8x128xf32>
    %102 = vector.extract_strided_slice %101 {offsets = [0, 0], sizes = [8, 96], strides = [1, 1]} : vector<8x128xf32> to vector<8x96xf32>
    %103 = arith.negf %102 : vector<8x96xf32>
    %104 = math.exp %103 : vector<8x96xf32>
    %cst_34 = arith.constant 1.000000e+00 : f32
    %105 = vector.broadcast %cst_34 : f32 to vector<8x96xf32>
    %106 = arith.addf %105, %104 : vector<8x96xf32>
    %107 = arith.divf %105, %106 : vector<8x96xf32>
    %108 = vector.extract_strided_slice %107 {offsets = [0, 0], sizes = [8, 32], strides = [1, 1]} : vector<8x96xf32> to vector<8x32xf32>
    %109 = vector.extract_strided_slice %107 {offsets = [0, 32], sizes = [8, 32], strides = [1, 1]} : vector<8x96xf32> to vector<8x32xf32>
    %110 = vector.extract_strided_slice %107 {offsets = [0, 64], sizes = [8, 32], strides = [1, 1]} : vector<8x96xf32> to vector<8x32xf32>
    %111 = vector.extract_strided_slice %101 {offsets = [0, 96], sizes = [8, 32], strides = [1, 1]} : vector<8x128xf32> to vector<8x32xf32>
    %112 = math.tanh %111 : vector<8x32xf32>
    %113 = arith.mulf %109, %94 : vector<8x32xf32>
    %114 = arith.mulf %108, %112 : vector<8x32xf32>
    %115 = arith.addf %113, %114 : vector<8x32xf32>
    %116 = math.tanh %115 : vector<8x32xf32>
    %117 = arith.mulf %110, %116 : vector<8x32xf32>
    %c5 = arith.constant 5 : index
    %c0_35 = arith.constant 0 : index
    %c0_36 = arith.constant 0 : index
    %118 = vector.load %arg8[%c5, %c0_35, %c0_36] : memref<8x8x128xf32, #tpu.memory_space<vmem>>, vector<1x8x128xf32>
    %119 = vector.shape_cast %118 : vector<1x8x128xf32> to vector<8x128xf32>
    %120 = arith.truncf %117 : vector<8x32xf32> to vector<8x32xbf16>
    %cst_37 = arith.constant dense<0.000000e+00> : vector<8x128xf32>
    %121 = tpu.matmul %120, %10, %cst_37 {dimension_numbers = #tpu.dot_dimension_numbers<[1], [0], [0], [1], [0, 0, 1, 1], [], []>} : vector<8x32xbf16>, vector<32x128xbf16>, vector<8x128xf32> -> vector<8x128xf32>
    %122 = arith.addf %119, %121 : vector<8x128xf32>
    %123 = vector.extract_strided_slice %122 {offsets = [0, 0], sizes = [8, 96], strides = [1, 1]} : vector<8x128xf32> to vector<8x96xf32>
    %124 = arith.negf %123 : vector<8x96xf32>
    %125 = math.exp %124 : vector<8x96xf32>
    %cst_38 = arith.constant 1.000000e+00 : f32
    %126 = vector.broadcast %cst_38 : f32 to vector<8x96xf32>
    %127 = arith.addf %126, %125 : vector<8x96xf32>
    %128 = arith.divf %126, %127 : vector<8x96xf32>
    %129 = vector.extract_strided_slice %128 {offsets = [0, 0], sizes = [8, 32], strides = [1, 1]} : vector<8x96xf32> to vector<8x32xf32>
    %130 = vector.extract_strided_slice %128 {offsets = [0, 32], sizes = [8, 32], strides = [1, 1]} : vector<8x96xf32> to vector<8x32xf32>
    %131 = vector.extract_strided_slice %128 {offsets = [0, 64], sizes = [8, 32], strides = [1, 1]} : vector<8x96xf32> to vector<8x32xf32>
    %132 = vector.extract_strided_slice %122 {offsets = [0, 96], sizes = [8, 32], strides = [1, 1]} : vector<8x128xf32> to vector<8x32xf32>
    %133 = math.tanh %132 : vector<8x32xf32>
    %134 = arith.mulf %130, %115 : vector<8x32xf32>
    %135 = arith.mulf %129, %133 : vector<8x32xf32>
    %136 = arith.addf %134, %135 : vector<8x32xf32>
    %137 = math.tanh %136 : vector<8x32xf32>
    %138 = arith.mulf %131, %137 : vector<8x32xf32>
    %c6 = arith.constant 6 : index
    %c0_39 = arith.constant 0 : index
    %c0_40 = arith.constant 0 : index
    %139 = vector.load %arg8[%c6, %c0_39, %c0_40] : memref<8x8x128xf32, #tpu.memory_space<vmem>>, vector<1x8x128xf32>
    %140 = vector.shape_cast %139 : vector<1x8x128xf32> to vector<8x128xf32>
    %141 = arith.truncf %138 : vector<8x32xf32> to vector<8x32xbf16>
    %cst_41 = arith.constant dense<0.000000e+00> : vector<8x128xf32>
    %142 = tpu.matmul %141, %10, %cst_41 {dimension_numbers = #tpu.dot_dimension_numbers<[1], [0], [0], [1], [0, 0, 1, 1], [], []>} : vector<8x32xbf16>, vector<32x128xbf16>, vector<8x128xf32> -> vector<8x128xf32>
    %143 = arith.addf %140, %142 : vector<8x128xf32>
    %144 = vector.extract_strided_slice %143 {offsets = [0, 0], sizes = [8, 96], strides = [1, 1]} : vector<8x128xf32> to vector<8x96xf32>
    %145 = arith.negf %144 : vector<8x96xf32>
    %146 = math.exp %145 : vector<8x96xf32>
    %cst_42 = arith.constant 1.000000e+00 : f32
    %147 = vector.broadcast %cst_42 : f32 to vector<8x96xf32>
    %148 = arith.addf %147, %146 : vector<8x96xf32>
    %149 = arith.divf %147, %148 : vector<8x96xf32>
    %150 = vector.extract_strided_slice %149 {offsets = [0, 0], sizes = [8, 32], strides = [1, 1]} : vector<8x96xf32> to vector<8x32xf32>
    %151 = vector.extract_strided_slice %149 {offsets = [0, 32], sizes = [8, 32], strides = [1, 1]} : vector<8x96xf32> to vector<8x32xf32>
    %152 = vector.extract_strided_slice %149 {offsets = [0, 64], sizes = [8, 32], strides = [1, 1]} : vector<8x96xf32> to vector<8x32xf32>
    %153 = vector.extract_strided_slice %143 {offsets = [0, 96], sizes = [8, 32], strides = [1, 1]} : vector<8x128xf32> to vector<8x32xf32>
    %154 = math.tanh %153 : vector<8x32xf32>
    %155 = arith.mulf %151, %136 : vector<8x32xf32>
    %156 = arith.mulf %150, %154 : vector<8x32xf32>
    %157 = arith.addf %155, %156 : vector<8x32xf32>
    %158 = math.tanh %157 : vector<8x32xf32>
    %159 = arith.mulf %152, %158 : vector<8x32xf32>
    %c7 = arith.constant 7 : index
    %c0_43 = arith.constant 0 : index
    %c0_44 = arith.constant 0 : index
    %160 = vector.load %arg8[%c7, %c0_43, %c0_44] : memref<8x8x128xf32, #tpu.memory_space<vmem>>, vector<1x8x128xf32>
    %161 = vector.shape_cast %160 : vector<1x8x128xf32> to vector<8x128xf32>
    %162 = arith.truncf %159 : vector<8x32xf32> to vector<8x32xbf16>
    %cst_45 = arith.constant dense<0.000000e+00> : vector<8x128xf32>
    %163 = tpu.matmul %162, %10, %cst_45 {dimension_numbers = #tpu.dot_dimension_numbers<[1], [0], [0], [1], [0, 0, 1, 1], [], []>} : vector<8x32xbf16>, vector<32x128xbf16>, vector<8x128xf32> -> vector<8x128xf32>
    %164 = arith.addf %161, %163 : vector<8x128xf32>
    %165 = vector.extract_strided_slice %164 {offsets = [0, 0], sizes = [8, 96], strides = [1, 1]} : vector<8x128xf32> to vector<8x96xf32>
    %166 = arith.negf %165 : vector<8x96xf32>
    %167 = math.exp %166 : vector<8x96xf32>
    %cst_46 = arith.constant 1.000000e+00 : f32
    %168 = vector.broadcast %cst_46 : f32 to vector<8x96xf32>
    %169 = arith.addf %168, %167 : vector<8x96xf32>
    %170 = arith.divf %168, %169 : vector<8x96xf32>
    %171 = vector.extract_strided_slice %170 {offsets = [0, 0], sizes = [8, 32], strides = [1, 1]} : vector<8x96xf32> to vector<8x32xf32>
    %172 = vector.extract_strided_slice %170 {offsets = [0, 32], sizes = [8, 32], strides = [1, 1]} : vector<8x96xf32> to vector<8x32xf32>
    %173 = vector.extract_strided_slice %170 {offsets = [0, 64], sizes = [8, 32], strides = [1, 1]} : vector<8x96xf32> to vector<8x32xf32>
    %174 = vector.extract_strided_slice %164 {offsets = [0, 96], sizes = [8, 32], strides = [1, 1]} : vector<8x128xf32> to vector<8x32xf32>
    %175 = math.tanh %174 : vector<8x32xf32>
    %176 = arith.mulf %172, %157 : vector<8x32xf32>
    %177 = arith.mulf %171, %175 : vector<8x32xf32>
    %178 = arith.addf %176, %177 : vector<8x32xf32>
    %179 = math.tanh %178 : vector<8x32xf32>
    %180 = arith.mulf %173, %179 : vector<8x32xf32>
    %181 = tpu.concatenate %33, %54, %75, %96, %117, %138, %159, %180 in 0 : vector<8x32xf32>, vector<8x32xf32>, vector<8x32xf32>, vector<8x32xf32>, vector<8x32xf32>, vector<8x32xf32>, vector<8x32xf32>, vector<8x32xf32> -> vector<64x32xf32>
    %182 = arith.truncf %181 : vector<64x32xf32> to vector<64x32xbf16>
    %c0_47 = arith.constant 0 : index
    %c0_48 = arith.constant 0 : index
    %183 = vector.load %arg5[%c0_47, %c0_48] : memref<32x128xbf16, #tpu.memory_space<vmem>>, vector<32x128xbf16>
    %cst_49 = arith.constant dense<0.000000e+00> : vector<64x128xf32>
    %184 = tpu.matmul %182, %183, %cst_49 {dimension_numbers = #tpu.dot_dimension_numbers<[1], [0], [0], [1], [0, 0, 1, 1], [], []>} : vector<64x32xbf16>, vector<32x128xbf16>, vector<64x128xf32> -> vector<64x128xf32>
    %c0_50 = arith.constant 0 : index
    %c0_51 = arith.constant 0 : index
    %185 = vector.load %arg6[%c0_50, %c0_51] : memref<1x128xf32, #tpu.memory_space<vmem>>, vector<1x128xf32>
    %186 = vector.broadcast %185 : vector<1x128xf32> to vector<64x128xf32>
    %187 = arith.addf %184, %186 : vector<64x128xf32>
    %188 = math.tanh %187 : vector<64x128xf32>
    %189 = vector.shape_cast %188 : vector<64x128xf32> to vector<8x8x128xf32>
    %c0_52 = arith.constant 0 : index
    %c0_53 = arith.constant 0 : index
    %c0_54 = arith.constant 0 : index
    %c0_55 = arith.constant 0 : index
    %190 = vector.load %arg7[%c0_52, %c0_53, %c0_54, %c0_55] : memref<1x8x8x128xf32, #tpu.memory_space<vmem>>, vector<1x8x8x128xf32>
    %191 = vector.shape_cast %190 : vector<1x8x8x128xf32> to vector<8x8x128xf32>
    %192 = vector.shape_cast %189 : vector<8x8x128xf32> to vector<1x8x8x128xf32>
    tpu.vector_store %arg7[%c0_52, %c0_53, %c0_54, %c0_55], %192 {strides = array<i32>} : memref<1x8x8x128xf32, #tpu.memory_space<vmem>>, vector<1x8x8x128xf32>,
    return
  }
  func.func @transform_0(%arg0: i32) -> (i32, i32, i32, i32) {
    %c0_i32 = arith.constant 0 : i32
    %c0_i32_0 = arith.constant 0 : i32
    %c0_i32_1 = arith.constant 0 : i32
    %c0_i32_2 = arith.constant 0 : i32
    return %arg0, %c0_i32, %c0_i32_0, %c0_i32_1 : i32, i32, i32, i32
  }
  func.func @transform_1(%arg0: i32) -> (i32, i32) {
    %c0_i32 = arith.constant 0 : i32
    %c0_i32_0 = arith.constant 0 : i32
    %c0_i32_1 = arith.constant 0 : i32
    return %c0_i32, %c0_i32_0 : i32, i32
  }
  func.func @transform_2(%arg0: i32) -> (i32, i32) {
    %c0_i32 = arith.constant 0 : i32
    %c0_i32_0 = arith.constant 0 : i32
    %c0_i32_1 = arith.constant 0 : i32
    return %c0_i32, %c0_i32_0 : i32, i32
  }
  func.func @transform_3(%arg0: i32) -> (i32, i32) {
    %c0_i32 = arith.constant 0 : i32
    %c0_i32_0 = arith.constant 0 : i32
    %c0_i32_1 = arith.constant 0 : i32
    return %c0_i32, %c0_i32_0 : i32, i32
  }
  func.func @transform_4(%arg0: i32) -> (i32, i32) {
    %c0_i32 = arith.constant 0 : i32
    %c0_i32_0 = arith.constant 0 : i32
    %c0_i32_1 = arith.constant 0 : i32
    return %c0_i32, %c0_i32_0 : i32, i32
  }
  func.func @transform_5(%arg0: i32) -> (i32, i32) {
    %c0_i32 = arith.constant 0 : i32
    %c0_i32_0 = arith.constant 0 : i32
    %c0_i32_1 = arith.constant 0 : i32
    return %c0_i32, %c0_i32_0 : i32, i32
  }
  func.func @transform_6(%arg0: i32) -> (i32, i32, i32, i32) {
    %c0_i32 = arith.constant 0 : i32
    %c0_i32_0 = arith.constant 0 : i32
    %c0_i32_1 = arith.constant 0 : i32
    %c0_i32_2 = arith.constant 0 : i32
    return %arg0, %c0_i32, %c0_i32_0, %c0_i32_1 : i32, i32, i32, i32
  }
}

</mosaic_0001>

<bundles_post_ra>
// kernel: tpu_custom_call.1
= control target key start
LH: loop header
LB: loop body
LE: loop exit
PB: predicated region body
PF: predicated region fallthrough
CT: control target
= control target key end

     0   :  { %11 = vsyncpa [#allocation4], 0  ;;  %s1618_s0 = inlined_call_operand.hbm [shape: bf16[1,8,8,8], index: 0, kind: input, shape index: {}]   ;;  %s1619_s1 = inlined_call_operand.hbm [shape: bf16[8,128], index: 1, kind: input, shape index: {}]   ;;  %s1620_s2 = inlined_call_operand.hbm [shape: bf16[32,128], index: 2, kind: input, shape index: {}]   ;;  %s1621_s3 = inlined_call_operand.vmem [shape: f32[1,128], index: 3, kind: input, shape index: {}]   ;;  %s1622_s4 = inlined_call_operand.hbm [shape: bf16[32,128], index: 4, kind: input, shape index: {}]   ;;  %s1623_s5 = inlined_call_operand.vmem [shape: f32[1,128], index: 5, kind: input, shape index: {}]   ;;  %s1624_s6 = inlined_call_operand.hbm [shape: f32[1,8,8,128], index: 6, kind: output, shape index: {}]  }
   0x1   :  { %12 = vsyncpa [#allocation7], 0 }
   0x2   :  { %13 = vsyncpa [#allocation10], 0 }
   0x3   :  { %14 = vsyncpa [#allocation5], 0  ;;  %s1336_s21 = smov [#allocation6]   ;;  %s1337_s23 = smov [#allocation3]  }
   0x4   :  { %s33_s22 = sshll.u32 %s1336_s21, 4  ;;  %s20_s24 = sshll.u32 %s1337_s23, 4  ;;  %s34_s22 = int_to_ptr.vmem [resolvable:$true] %s33_s22  ;;  %s1384_s24 = int_to_ptr.vmem [resolvable:$true] %s20_s24 }
   0x5   :  { %s1218_s27 = scalar_lea.hbm %s1619_s1, 64 }
   0x6   :  { %p1219_p0 = scmp.ne.s32.totalorder %s1619_s1, %s1218_s27  ;;  %p1222_p1 = scmp.lt.u32.totalorder %s1218_s27, %s1619_s1 }
   0x8   :  { %p1224_p2 = pnand %p1222_p1, %p1219_p0 }
   0xa   :  { %1227 = shalt.err (!%p1224_p2)
}
   0xb   :  { %s1228_s8 = scalar_lea.vmem %s34_s22, 64  ;;  %p1233_p4 = scmp.lt.s32.totalorder %s34_s22, %s34_s22 }
   0xc   :  { %p1229_p3 = scmp.ne.s32.totalorder %s34_s22, %s1228_s8  ;;  %p1234_p5 = scmp.lt.s32.totalorder %s1228_s8, %s1228_s8 }
   0xe   :  { %p1235_p6 = por %p1234_p5, %p1233_p4 }
  0x10   :  { %p1236_p7 = pnand %p1235_p6, %p1229_p3 }
  0x12   :  { %1239 = shalt.err (!%p1236_p7)
}
  0x13   :  { %36 = dma.hbm_to_vmem [thread:$0]  %s1619_s1, 64, %s34_s22, [#allocation7]  }
  0x14   :  { %s1240_s13 = scalar_lea.hbm %s1618_s0, 512 }
  0x15   :  { %p1241_p8 = scmp.ne.s32.totalorder %s1618_s0, %s1240_s13  ;;  %p1244_p9 = scmp.lt.u32.totalorder %s1240_s13, %s1618_s0 }
  0x17   :  { %p1246_p10 = pnand %p1244_p9, %p1241_p8 }
  0x19   :  { %1249 = shalt.err (!%p1246_p10)
}
  0x1a   :  { %s1250_s18 = scalar_lea.vmem %s1384_s24, 512  ;;  %p1255_p12 = scmp.lt.s32.totalorder %s1384_s24, %s1384_s24 }
  0x1b   :  { %p1251_p11 = scmp.ne.s32.totalorder %s1384_s24, %s1250_s18  ;;  %p1256_p13 = scmp.lt.s32.totalorder %s1250_s18, %s1250_s18 }
  0x1d   :  { %p1257_p0 = por %p1256_p13, %p1255_p12 }
  0x1f   :  { %p1258_p1 = pnand %p1257_p0, %p1251_p11 }
  0x21   :  { %1261 = shalt.err (!%p1258_p1)
}
  0x22   :  { %s1338_s1 = smov 64   ;;  %s1339_s19 = smov 4  }
  0x23   :  { %26 = dma.hbm_to_vmem [thread:$0]  %s1618_s0, 512, %s1384_s24, [#allocation4], %s1338_s1, %s1338_s1, %s1339_s19  }
  0x24   :  { %s1340_s22 = smov [#allocation8]   ;;  %s1341_s25 = smov [#allocation9]  }
  0x25   :  { %s42_s23 = sshll.u32 %s1340_s22, 4  ;;  %s56_s26 = sshll.u32 %s1341_s25, 4  ;;  %s43_s23 = int_to_ptr.vmem [resolvable:$true] %s42_s23  ;;  %s1418_s26 = int_to_ptr.vmem [resolvable:$true] %s56_s26 }
  0x26   :  { %s1262_s29 = scalar_lea.hbm %s1620_s2, 256 }
  0x27   :  { %p1263_p2 = scmp.ne.s32.totalorder %s1620_s2, %s1262_s29  ;;  %p1266_p3 = scmp.lt.u32.totalorder %s1262_s29, %s1620_s2 }
  0x29   :  { %p1268_p4 = pnand %p1266_p3, %p1263_p2 }
  0x2b   :  { %1271 = shalt.err (!%p1268_p4)
}
  0x2c   :  { %s1272_s0 = scalar_lea.vmem %s43_s23, 256  ;;  %p1277_p6 = scmp.lt.s32.totalorder %s43_s23, %s43_s23 }
  0x2d   :  { %p1273_p5 = scmp.ne.s32.totalorder %s43_s23, %s1272_s0  ;;  %p1278_p7 = scmp.lt.s32.totalorder %s1272_s0, %s1272_s0 }
  0x2f   :  { %p1279_p8 = por %p1278_p7, %p1277_p6 }
  0x31   :  { %p1280_p9 = pnand %p1279_p8, %p1273_p5 }
  0x33   :  { %1283 = shalt.err (!%p1280_p9)
}
  0x34   :  { %48 = dma.hbm_to_vmem [thread:$0]  %s1620_s2, 256, %s43_s23, [#allocation7], %s1338_s1, %s1338_s1, %s1339_s19  }
  0x35   :  { %s1284_s13 = scalar_lea.hbm %s1622_s4, 256 }
  0x36   :  { %p1285_p10 = scmp.ne.s32.totalorder %s1622_s4, %s1284_s13  ;;  %p1288_p11 = scmp.lt.u32.totalorder %s1284_s13, %s1622_s4 }
  0x38   :  { %p1290_p12 = pnand %p1288_p11, %p1285_p10 }
  0x3a   :  { %1293 = shalt.err (!%p1290_p12)
}
  0x3b   :  { %s1294_s18 = scalar_lea.vmem %s1418_s26, 256  ;;  %p1299_p0 = scmp.lt.s32.totalorder %s1418_s26, %s1418_s26 }
  0x3c   :  { %p1295_p13 = scmp.ne.s32.totalorder %s1418_s26, %s1294_s18  ;;  %p1300_p1 = scmp.lt.s32.totalorder %s1294_s18, %s1294_s18 }
  0x3e   :  { %p1301_p2 = por %p1300_p1, %p1299_p0 }
  0x40   :  { %p1302_p3 = pnand %p1301_p2, %p1295_p13 }
  0x42   :  { %1305 = shalt.err (!%p1302_p3)
}
  0x43   :  { %62 = dma.hbm_to_vmem [thread:$0]  %s1622_s4, 256, %s1418_s26, [#allocation10], %s1338_s1, %s1338_s1, %s1339_s19  }
  0x44   :  { %1328 = dma.done.wait [#allocation4], 512  }
  0x45   :  { %1329 = vsyncadd [#allocation4], 4294966784 }
  0x46   :  { %1330 = dma.done.wait [#allocation7], 320  }
  0x47   :  { %1331 = vsyncadd [#allocation7], 4294966976 }
  0x48   :  { %1332 = dma.done.wait [#allocation10], 256  }
  0x49   :  { %1333 = vsyncadd [#allocation10], 4294967040  ;;  %vm127_vm0 = vcmask 1043456   ;;  %vm114_vm1 = vcmask 64512   ;;  %v86_v0 = vld [vmem:[#allocation6] sm:$0xf] }
  0x4a   :  { %1116 = vmatprep.subr.msk.bf16.mxu1 %vm127_vm0, %v86_v0  ;;  %v129_v1 = vsel %vm127_vm0, %v86_v0, 0  ;;  %1115 = vmatprep.subr.msk.bf16.mxu0 %vm127_vm0, %v86_v0  ;;  %v1130_v2 = vld [vmem:[#allocation3 + $0x10] sm:$0xff]   ;;  %v1131_v3 = vld [vmem:[#allocation3 + $0x18] sm:$0xff]   ;;  %v1342_v4 = vmov 0.0   ;;  %v1457_v5 = vld [vmem:[#allocation8] sm:$0xff]   ;;  %vm1343_vm2 = vmmov 0  }
  0x4b   :  { %1114 = vmatpush3.bf16.msra.mxu1 %v129_v1  ;;  %1028 = vmatpush3.bf16.msra.mxu0 %v129_v1  ;;  %v1133_v6 = vld [vmem:[#allocation3] sm:$0xff]   ;;  %v1134_v7 = vld [vmem:[#allocation3 + $0x8] sm:$0xff]   ;;  %v1344_v9 = vmov 0   ;;  %vm221_vm3 = vcmask 261120  }
  0x4c   :  { %1033 = vmatprep.mubr.msk.bf16.mxu1 %vm114_vm1, %v1130_v2  ;;  %1037 = vmatprep.subr.bf16.mxu1 %v1342_v4  ;;  %v1463_v8 = vld [vmem:[#allocation8 + $0x8] sm:$0xff]   ;;  %v959_v10 = vld [vmem:[%s1621_s3] ss:$0 sm:$0xff]  ;;  %s1345_s3 = smov 32  }
  0x4d   :  { %1053 = vmatprep.subr.bf16.mxu0 %v1342_v4  ;;  %1029 = vmatprep.mubr.msk.bf16.mxu0 %vm114_vm1, %v1133_v6 }
  0x4e   :  { %1034 = vmatmul.mubr.msk.bf16.vlgmr.msra.gmra.mrb[0].mxu1 %vm114_vm1, %v1131_v3  ;;  %1030 = vmatmul.mubr.msk.bf16.vlgmr.msra.gmra.mrb[0].mxu0 %vm114_vm1, %v1134_v7 }
  0x4f   :  { %1038 = vmatpush3.bf16.msra.mxu1 %v1457_v5  ;;  %1041 = vmatprep.mubr.msk.bf16.mxu1 %vm1343_vm2, %v1342_v4 }
  0x50   :  { %1039 = vmatprep.subr.bf16.mxu1 %v1342_v4  ;;  %1054 = vmatpush3.bf16.msra.mxu0 %v1457_v5 }
  0x51   :  { %1055 = vmatprep.subr.bf16.mxu0 %v1342_v4  ;;  %1057 = vmatprep.mubr.msk.bf16.mxu0 %vm1343_vm2, %v1342_v4 }
  0x53   :  { %1040 = vmatpush3.bf16.msra.mxu1 %v1463_v8 }
  0x54   :  { %1045 = vmatprep.subr.bf16.mxu1 %v1342_v4  ;;  %1056 = vmatpush3.bf16.msra.mxu0 %v1463_v8 }
  0x55   :  { %1069 = vmatprep.subr.bf16.mxu0 %v1342_v4 }
  0x56   :  { %1042 = vmatmul.mubr.bf16.vlgmr.msra.gmra.mrb[4].mxu1 %v1344_v9 }
  0x57   :  { %1046 = vmatpush3.bf16.msra.mxu1 %v1457_v5  ;;  %1049 = vmatprep.mubr.msk.bf16.mxu1 %vm1343_vm2, %v1342_v4 }
  0x58   :  { %1047 = vmatprep.subr.bf16.mxu1 %v1342_v4 }
  0x5b   :  { %1048 = vmatpush3.bf16.msra.mxu1 %v1463_v8 }
  0x5c   :  { %1061 = vmatprep.subr.bf16.mxu1 %v1342_v4 }
 0x121   :  { %v1035_v11 = vpop.f32.mrb[0].mxu1  ;;  %v1031_v16 = vpop.f32.mrb[0].mxu0 }
 0x122   :  { %v1486_v12 = vadd.f32 %v1035_v11, %v959_v10  ;;  %v181_v13 = vpop.f32.mrb[1].mxu1  ;;  %v1492_v18 = vadd.f32 %v1031_v16, %v959_v10  ;;  %v165_v20 = vpop.f32.mrb[1].mxu0 }
 0x123   :  { %v1488_v14 = vadd.f32 %v959_v10, %v181_v13  ;;  %v1036_v15 = vpop.f32.mrb[2].mxu1  ;;  %v1032_v22 = vpop.f32.mrb[2].mxu0  ;;  %v166_v23 = vadd.f32 %v959_v10, %v165_v20 }
 0x124   :  { %v1490_v17 = vadd.f32 %v1036_v15, %v959_v10  ;;  %v184_v19 = vpop.f32.mrb[3].mxu1  ;;  %v1496_v24 = vadd.f32 %v1032_v22, %v959_v10  ;;  %v168_v25 = vpop.f32.mrb[3].mxu0 }
 0x125   :  { %v1494_v21 = vadd.f32 %v959_v10, %v184_v19  ;;  %v169_v26 = vadd.f32 %v959_v10, %v168_v25 }
 0x129   :  { %v259_v27 = vpop.f32.mrb[4].mxu1 }
 0x12a   :  { %v265_v28 = vadd.f32 %v259_v27, %v166_v23  ;;  %v1043_v29 = vpop.f32.mrb[5].mxu1 }
 0x12b   :  { %v262_v30 = vpop.f32.mrb[6].mxu1 }
 0x12c   :  { %1138 = vtanh.f32 %v265_v28  ;;  %v1044_v31 = vpop.f32.mrb[7].mxu1  ;;  %v970_v33 = vmul.f32 -1.442695, %v265_v28 }
 0x12e   :  { %1140 = vpow2.f32 %v970_v33 }
 0x136   :  { %v1139_v32 = vpop.eup %1138 }
 0x137   :  { %275 = vrot.lane.b32.xlu0 %v1139_v32, %s1345_s3 }
 0x138   :  { %v1141_v34 = vpop.eup %1140 }
 0x139   :  { %v269_v35 = vadd.f32 1.0, %v1141_v34 }
 0x13b   :  { %1142 = vrcp.f32 %v269_v35 }
 0x145   :  { %v1143_v36 = vpop.eup %1142 }
 0x146   :  { %v273_v39 = vmul.f32 0.0, %v1143_v36 }
 0x1a9   :  { %v276_v37 = vpop.permute.xlu0 %275 }
 0x1aa   :  { %v278_v38 = vmul.f32 %v1143_v36, %v276_v37 }
 0x1ac   :  { %280 = vrot.lane.b32.xlu0 %v278_v38, %s1345_s3 }
 0x21e   :  { %v281_v40 = vpop.permute.xlu0 %280 }
 0x21f   :  { %v283_v41 = vadd.f32 %v281_v40, %v273_v39 }
 0x221   :  { %1144 = vtanh.f32 %v283_v41 }
 0x22b   :  { %v1145_v42 = vpop.eup %1144 }
 0x22c   :  { %286 = vrot.lane.b32.xlu1 %v1145_v42, %s1345_s3 }
 0x29e   :  { %v287_v43 = vpop.permute.xlu1 %286 }
 0x29f   :  { %v1501_v44 = vmul.f32 %v1143_v36, %v287_v43 }
 0x2a1   :  { %v292_v45 = vpack.c.bf16 %v1501_v44, %v1501_v44 }
 0x2a3   :  { %294 = vrot.lane.b32.xlu1 %v292_v45, %s1338_s1 }
 0x315   :  { %v295_v46 = vpop.permute.xlu1 %294 }
 0x316   :  { %1050 = vmatmul.mubr.msk.bf16.vlgmr.msra.gmra.mrb[8].mxu1 %vm221_vm3, %v295_v46 }
 0x317   :  { %1062 = vmatpush3.bf16.msra.mxu1 %v1457_v5  ;;  %1065 = vmatprep.mubr.msk.bf16.mxu1 %vm1343_vm2, %v1342_v4 }
 0x318   :  { %1063 = vmatprep.subr.bf16.mxu1 %v1342_v4 }
 0x31b   :  { %1064 = vmatpush3.bf16.msra.mxu1 %v1463_v8 }
 0x31c   :  { %1077 = vmatprep.subr.bf16.mxu1 %v1342_v4 }
 0x3e9   :  { %v333_v47 = vpop.f32.mrb[8].mxu1 }
 0x3ea   :  { %v339_v48 = vadd.f32 %v333_v47, %v169_v26  ;;  %v1051_v49 = vpop.f32.mrb[9].mxu1 }
 0x3eb   :  { %v336_v50 = vpop.f32.mrb[10].mxu1 }
 0x3ec   :  { %1146 = vtanh.f32 %v339_v48  ;;  %v1052_v51 = vpop.f32.mrb[11].mxu1  ;;  %v972_v53 = vmul.f32 -1.442695, %v339_v48 }
 0x3ee   :  { %1148 = vpow2.f32 %v972_v53 }
 0x3f6   :  { %v1147_v52 = vpop.eup %1146 }
 0x3f7   :  { %349 = vrot.lane.b32.xlu0 %v1147_v52, %s1345_s3 }
 0x3f8   :  { %v1149_v54 = vpop.eup %1148 }
 0x3f9   :  { %v343_v55 = vadd.f32 1.0, %v1149_v54 }
 0x3fb   :  { %1150 = vrcp.f32 %v343_v55 }
 0x405   :  { %v1151_v56 = vpop.eup %1150 }
 0x406   :  { %v347_v59 = vmul.f32 %v1151_v56, %v283_v41 }
 0x469   :  { %v350_v57 = vpop.permute.xlu0 %349 }
 0x46a   :  { %v352_v58 = vmul.f32 %v1151_v56, %v350_v57 }
 0x46c   :  { %354 = vrot.lane.b32.xlu1 %v352_v58, %s1345_s3 }
 0x4de   :  { %v355_v60 = vpop.permute.xlu1 %354 }
 0x4df   :  { %v357_v61 = vadd.f32 %v355_v60, %v347_v59 }
 0x4e1   :  { %1152 = vtanh.f32 %v357_v61 }
 0x4eb   :  { %v1153_v62 = vpop.eup %1152 }
 0x4ec   :  { %360 = vrot.lane.b32.xlu0 %v1153_v62, %s1345_s3 }
 0x55e   :  { %v361_v63 = vpop.permute.xlu0 %360 }
 0x55f   :  { %v1516_v0 = vmul.f32 %v1151_v56, %v361_v63 }
 0x561   :  { %v366_v1 = vpack.c.bf16 %v1516_v0, %v1516_v0 }
 0x563   :  { %368 = vrot.lane.b32.xlu1 %v366_v1, %s1338_s1 }
 0x5d5   :  { %v369_v2 = vpop.permute.xlu1 %368 }
 0x5d6   :  { %1058 = vmatmul.mubr.msk.bf16.vlgmr.msra.gmra.mrb[4].mxu0 %vm221_vm3, %v369_v2 }
 0x5d7   :  { %1070 = vmatpush3.bf16.msra.mxu0 %v1457_v5  ;;  %1073 = vmatprep.mubr.msk.bf16.mxu0 %vm1343_vm2, %v1342_v4 }
 0x5d8   :  { %1071 = vmatprep.subr.bf16.mxu0 %v1342_v4 }
 0x5db   :  { %1072 = vmatpush3.bf16.msra.mxu0 %v1463_v8 }
 0x5dc   :  { %1085 = vmatprep.subr.bf16.mxu0 %v1342_v4 }
 0x6a9   :  { %v407_v3 = vpop.f32.mrb[4].mxu0 }
 0x6aa   :  { %v413_v6 = vadd.f32 %v407_v3, %v1492_v18  ;;  %v1059_v7 = vpop.f32.mrb[5].mxu0 }
 0x6ab   :  { %v410_v9 = vpop.f32.mrb[6].mxu0 }
 0x6ac   :  { %1154 = vtanh.f32 %v413_v6  ;;  %v1060_v10 = vpop.f32.mrb[7].mxu0  ;;  %v974_v13 = vmul.f32 -1.442695, %v413_v6 }
 0x6ae   :  { %1156 = vpow2.f32 %v974_v13 }
 0x6b6   :  { %v1155_v11 = vpop.eup %1154 }
 0x6b7   :  { %423 = vrot.lane.b32.xlu0 %v1155_v11, %s1345_s3 }
 0x6b8   :  { %v1157_v15 = vpop.eup %1156 }
 0x6b9   :  { %v417_v16 = vadd.f32 1.0, %v1157_v15 }
 0x6bb   :  { %1158 = vrcp.f32 %v417_v16 }
 0x6c5   :  { %v1159_v19 = vpop.eup %1158 }
 0x6c6   :  { %v421_v23 = vmul.f32 %v1159_v19, %v357_v61 }
 0x729   :  { %v424_v20 = vpop.permute.xlu0 %423 }
 0x72a   :  { %v426_v22 = vmul.f32 %v1159_v19, %v424_v20 }
 0x72c   :  { %428 = vrot.lane.b32.xlu1 %v426_v22, %s1345_s3 }
 0x79e   :  { %v429_v25 = vpop.permute.xlu1 %428 }
 0x79f   :  { %v431_v18 = vadd.f32 %v429_v25, %v421_v23 }
 0x7a1   :  { %1160 = vtanh.f32 %v431_v18 }
 0x7ab   :  { %v1161_v26 = vpop.eup %1160 }
 0x7ac   :  { %434 = vrot.lane.b32.xlu0 %v1161_v26, %s1345_s3 }
 0x81e   :  { %v435_v27 = vpop.permute.xlu0 %434 }
 0x81f   :  { %v1532_v28 = vmul.f32 %v1159_v19, %v435_v27 }
 0x821   :  { %v440_v29 = vpack.c.bf16 %v1532_v28, %v1532_v28 }
 0x823   :  { %442 = vrot.lane.b32.xlu1 %v440_v29, %s1338_s1 }
 0x895   :  { %v443_v30 = vpop.permute.xlu1 %442 }
 0x896   :  { %1066 = vmatmul.mubr.msk.bf16.vlgmr.msra.gmra.mrb[12].mxu1 %vm221_vm3, %v443_v30 }
 0x897   :  { %1078 = vmatpush3.bf16.msra.mxu1 %v1457_v5  ;;  %1081 = vmatprep.mubr.msk.bf16.mxu1 %vm1343_vm2, %v1342_v4 }
 0x898   :  { %1079 = vmatprep.subr.bf16.mxu1 %v1342_v4 }
 0x89b   :  { %1080 = vmatpush3.bf16.msra.mxu1 %v1463_v8 }
 0x89c   :  { %1093 = vmatprep.subr.bf16.mxu1 %v1342_v4 }
 0x969   :  { %v481_v31 = vpop.f32.mrb[12].mxu1 }
 0x96a   :  { %v487_v32 = vadd.f32 %v481_v31, %v1496_v24  ;;  %v1067_v33 = vpop.f32.mrb[13].mxu1 }
 0x96b   :  { %v484_v34 = vpop.f32.mrb[14].mxu1 }
 0x96c   :  { %1162 = vtanh.f32 %v487_v32  ;;  %v1068_v35 = vpop.f32.mrb[15].mxu1  ;;  %v976_v37 = vmul.f32 -1.442695, %v487_v32 }
 0x96e   :  { %1164 = vpow2.f32 %v976_v37 }
 0x976   :  { %v1163_v36 = vpop.eup %1162 }
 0x977   :  { %497 = vrot.lane.b32.xlu0 %v1163_v36, %s1345_s3 }
 0x978   :  { %v1165_v38 = vpop.eup %1164 }
 0x979   :  { %v491_v39 = vadd.f32 1.0, %v1165_v38 }
 0x97b   :  { %1166 = vrcp.f32 %v491_v39 }
 0x985   :  { %v1167_v40 = vpop.eup %1166 }
 0x986   :  { %v495_v43 = vmul.f32 %v1167_v40, %v431_v18 }
 0x9e9   :  { %v498_v41 = vpop.permute.xlu0 %497 }
 0x9ea   :  { %v500_v42 = vmul.f32 %v1167_v40, %v498_v41 }
 0x9ec   :  { %502 = vrot.lane.b32.xlu1 %v500_v42, %s1345_s3 }
 0xa5e   :  { %v503_v45 = vpop.permute.xlu1 %502 }
 0xa5f   :  { %v505_v24 = vadd.f32 %v503_v45, %v495_v43 }
 0xa61   :  { %1168 = vtanh.f32 %v505_v24 }
 0xa6b   :  { %v1169_v46 = vpop.eup %1168 }
 0xa6c   :  { %508 = vrot.lane.b32.xlu0 %v1169_v46, %s1345_s3 }
 0xade   :  { %v509_v47 = vpop.permute.xlu0 %508 }
 0xadf   :  { %v1548_v48 = vmul.f32 %v1167_v40, %v509_v47 }
 0xae1   :  { %v514_v49 = vpack.c.bf16 %v1548_v48, %v1548_v48 }
 0xae3   :  { %516 = vrot.lane.b32.xlu1 %v514_v49, %s1338_s1 }
 0xb55   :  { %v517_v50 = vpop.permute.xlu1 %516 }
 0xb56   :  { %1074 = vmatmul.mubr.msk.bf16.vlgmr.msra.gmra.mrb[8].mxu0 %vm221_vm3, %v517_v50 }
 0xb57   :  { %1086 = vmatpush3.bf16.msra.mxu0 %v1457_v5  ;;  %1089 = vmatprep.mubr.msk.bf16.mxu0 %vm1343_vm2, %v1342_v4 }
 0xb58   :  { %1087 = vmatprep.subr.bf16.mxu0 %v1342_v4 }
 0xb5b   :  { %1088 = vmatpush3.bf16.msra.mxu0 %v1463_v8 }
 0xc29   :  { %v555_v51 = vpop.f32.mrb[8].mxu0 }
 0xc2a   :  { %v561_v52 = vadd.f32 %v555_v51, %v1488_v14  ;;  %v1075_v53 = vpop.f32.mrb[9].mxu0 }
 0xc2b   :  { %v558_v54 = vpop.f32.mrb[10].mxu0 }
 0xc2c   :  { %1170 = vtanh.f32 %v561_v52  ;;  %v1076_v55 = vpop.f32.mrb[11].mxu0  ;;  %v978_v57 = vmul.f32 -1.442695, %v561_v52 }
 0xc2e   :  { %1172 = vpow2.f32 %v978_v57 }
 0xc36   :  { %v1171_v56 = vpop.eup %1170 }
 0xc37   :  { %571 = vrot.lane.b32.xlu0 %v1171_v56, %s1345_s3 }
 0xc38   :  { %v1173_v58 = vpop.eup %1172 }
 0xc39   :  { %v565_v59 = vadd.f32 1.0, %v1173_v58 }
 0xc3b   :  { %1174 = vrcp.f32 %v565_v59 }
 0xc45   :  { %v1175_v60 = vpop.eup %1174 }
 0xc46   :  { %v569_v63 = vmul.f32 %v1175_v60, %v505_v24 }
 0xca9   :  { %v572_v61 = vpop.permute.xlu0 %571 }
 0xcaa   :  { %v574_v62 = vmul.f32 %v1175_v60, %v572_v61 }
 0xcac   :  { %576 = vrot.lane.b32.xlu1 %v574_v62, %s1345_s3 }
 0xd1e   :  { %v577_v1 = vpop.permute.xlu1 %576 }
 0xd1f   :  { %v579_v14 = vadd.f32 %v577_v1, %v569_v63  ;;  %v1136_v1 = vld [vmem:[#allocation9] sm:$0xff]  }
 0xd20   :  { %1101 = vmatprep.subr.bf16.mxu0 %v1136_v1 }
 0xd21   :  { %1176 = vtanh.f32 %v579_v14 }
 0xd2b   :  { %v1177_v2 = vpop.eup %1176 }
 0xd2c   :  { %582 = vrot.lane.b32.xlu0 %v1177_v2, %s1345_s3 }
 0xd9e   :  { %v583_v3 = vpop.permute.xlu0 %582 }
 0xd9f   :  { %v1563_v6 = vmul.f32 %v1175_v60, %v583_v3  ;;  %v1137_v3 = vld [vmem:[#allocation9 + $0x8] sm:$0xff]  }
 0xda1   :  { %v588_v7 = vpack.c.bf16 %v1563_v6, %v1563_v6 }
 0xda3   :  { %590 = vrot.lane.b32.xlu1 %v588_v7, %s1338_s1 }
 0xe15   :  { %v591_v9 = vpop.permute.xlu1 %590 }
 0xe16   :  { %1082 = vmatmul.mubr.msk.bf16.vlgmr.msra.gmra.mrb[16].mxu1 %vm221_vm3, %v591_v9 }
 0xe17   :  { %1094 = vmatpush3.bf16.msra.mxu1 %v1457_v5  ;;  %1097 = vmatprep.mubr.msk.bf16.mxu1 %vm1343_vm2, %v1342_v4 }
 0xe18   :  { %1095 = vmatprep.subr.bf16.mxu1 %v1342_v4 }
 0xe1b   :  { %1096 = vmatpush3.bf16.msra.mxu1 %v1463_v8 }
 0xee9   :  { %v629_v10 = vpop.f32.mrb[16].mxu1 }
 0xeea   :  { %v635_v11 = vadd.f32 %v629_v10, %v1494_v21  ;;  %v1083_v13 = vpop.f32.mrb[17].mxu1 }
 0xeeb   :  { %v632_v15 = vpop.f32.mrb[18].mxu1 }
 0xeec   :  { %1178 = vtanh.f32 %v635_v11  ;;  %v1084_v16 = vpop.f32.mrb[19].mxu1  ;;  %v980_v20 = vmul.f32 -1.442695, %v635_v11 }
 0xeee   :  { %1180 = vpow2.f32 %v980_v20 }
 0xef6   :  { %v1179_v19 = vpop.eup %1178 }
 0xef7   :  { %645 = vrot.lane.b32.xlu0 %v1179_v19, %s1345_s3 }
 0xef8   :  { %v1181_v5 = vpop.eup %1180 }
 0xef9   :  { %v639_v22 = vadd.f32 1.0, %v1181_v5 }
 0xefb   :  { %1182 = vrcp.f32 %v639_v22 }
 0xf05   :  { %v1183_v23 = vpop.eup %1182 }
 0xf06   :  { %v643_v8 = vmul.f32 %v1183_v23, %v579_v14 }
 0xf69   :  { %v646_v25 = vpop.permute.xlu0 %645 }
 0xf6a   :  { %v648_v4 = vmul.f32 %v1183_v23, %v646_v25 }
 0xf6c   :  { %650 = vrot.lane.b32.xlu1 %v648_v4, %s1345_s3 }
 0xfde   :  { %v651_v18 = vpop.permute.xlu1 %650 }
 0xfdf   :  { %v653_v21 = vadd.f32 %v651_v18, %v643_v8 }
 0xfe1   :  { %1184 = vtanh.f32 %v653_v21 }
 0xfeb   :  { %v1185_v26 = vpop.eup %1184 }
 0xfec   :  { %656 = vrot.lane.b32.xlu0 %v1185_v26, %s1345_s3 }
0x105e   :  { %v657_v27 = vpop.permute.xlu0 %656 }
0x105f   :  { %v659_v29 = vmul.f32 %v1183_v23, %v657_v27 }
0x1061   :  { %v662_v30 = vpack.c.bf16 %v659_v29, %v659_v29  ;;  %v810_v14 = vpack.c.bf16 %v659_v29, %v1563_v6 }
0x1063   :  { %664 = vrot.lane.b32.xlu1 %v662_v30, %s1338_s1 }
0x10d5   :  { %v665_v31 = vpop.permute.xlu1 %664 }
0x10d6   :  { %1090 = vmatmul.mubr.msk.bf16.vlgmr.msra.gmra.mrb[12].mxu0 %vm221_vm3, %v665_v31 }
0x10d7   :  { %1102 = vmatpush3.bf16.msra.mxu0 %v1136_v1 }
0x10d8   :  { %1103 = vmatprep.subr.bf16.mxu0 %v1137_v3 }
0x10db   :  { %1104 = vmatpush3.bf16.msra.mxu0 %v1137_v3 }
0x11a9   :  { %v703_v32 = vpop.f32.mrb[12].mxu0 }
0x11aa   :  { %v709_v33 = vadd.f32 %v703_v32, %v1486_v12  ;;  %v1091_v34 = vpop.f32.mrb[13].mxu0 }
0x11ab   :  { %v706_v35 = vpop.f32.mrb[14].mxu0 }
0x11ac   :  { %1186 = vtanh.f32 %v709_v33  ;;  %v1092_v36 = vpop.f32.mrb[15].mxu0  ;;  %v982_v38 = vmul.f32 -1.442695, %v709_v33 }
0x11ae   :  { %1188 = vpow2.f32 %v982_v38 }
0x11b6   :  { %v1187_v37 = vpop.eup %1186 }
0x11b7   :  { %719 = vrot.lane.b32.xlu0 %v1187_v37, %s1345_s3 }
0x11b8   :  { %v1189_v39 = vpop.eup %1188 }
0x11b9   :  { %v713_v40 = vadd.f32 1.0, %v1189_v39 }
0x11bb   :  { %1190 = vrcp.f32 %v713_v40 }
0x11c5   :  { %v1191_v41 = vpop.eup %1190 }
0x11c6   :  { %v717_v45 = vmul.f32 %v1191_v41, %v653_v21 }
0x1229   :  { %v720_v42 = vpop.permute.xlu0 %719 }
0x122a   :  { %v722_v43 = vmul.f32 %v1191_v41, %v720_v42 }
0x122c   :  { %724 = vrot.lane.b32.xlu1 %v722_v43, %s1345_s3 }
0x129e   :  { %v725_v24 = vpop.permute.xlu1 %724 }
0x129f   :  { %v727_v12 = vadd.f32 %v725_v24, %v717_v45 }
0x12a1   :  { %1192 = vtanh.f32 %v727_v12 }
0x12ab   :  { %v1193_v46 = vpop.eup %1192 }
0x12ac   :  { %730 = vrot.lane.b32.xlu0 %v1193_v46, %s1345_s3 }
0x131e   :  { %v731_v47 = vpop.permute.xlu0 %730 }
0x131f   :  { %v733_v49 = vmul.f32 %v1191_v41, %v731_v47 }
0x1321   :  { %v736_v50 = vpack.c.bf16 %v733_v49, %v733_v49 }
0x1323   :  { %738 = vrot.lane.b32.xlu1 %v736_v50, %s1338_s1 }
0x1395   :  { %v739_v51 = vpop.permute.xlu1 %738 }
0x1396   :  { %1098 = vmatmul.mubr.msk.bf16.vlgmr.msra.gmra.mrb[20].mxu1 %vm221_vm3, %v739_v51 }
0x1469   :  { %v777_v52 = vpop.f32.mrb[20].mxu1 }
0x146a   :  { %v783_v53 = vadd.f32 %v777_v52, %v1490_v17  ;;  %v1099_v54 = vpop.f32.mrb[21].mxu1  ;;  %v808_v17 = vpack.c.bf16 %v1516_v0, %v1501_v44  ;;  %v809_v0 = vpack.c.bf16 %v1548_v48, %v1532_v28  ;;  %v985_v28 = vld [vmem:[%s1623_s5] ss:$0 sm:$0xff]  ;;  %s1346_s5 = smov [#allocation11]  }
0x146b   :  { %v780_v55 = vpop.f32.mrb[22].mxu1 }
0x146c   :  { %1194 = vtanh.f32 %v783_v53  ;;  %v1100_v56 = vpop.f32.mrb[23].mxu1  ;;  %v984_v58 = vmul.f32 -1.442695, %v783_v53 }
0x146e   :  { %1196 = vpow2.f32 %v984_v58 }
0x1476   :  { %v1195_v57 = vpop.eup %1194 }
0x1477   :  { %793 = vrot.lane.b32.xlu0 %v1195_v57, %s1345_s3 }
0x1478   :  { %v1197_v59 = vpop.eup %1196 }
0x1479   :  { %v787_v60 = vadd.f32 1.0, %v1197_v59 }
0x147b   :  { %1198 = vrcp.f32 %v787_v60 }
0x1485   :  { %v1199_v61 = vpop.eup %1198 }
0x1486   :  { %v791_v2 = vmul.f32 %v1199_v61, %v727_v12 }
0x14e9   :  { %v794_v62 = vpop.permute.xlu0 %793 }
0x14ea   :  { %v796_v63 = vmul.f32 %v1199_v61, %v794_v62 }
0x14ec   :  { %798 = vrot.lane.b32.xlu1 %v796_v63, %s1345_s3 }
0x14f0   :  { %827 = vrot.lane.b32.xlu1 %v808_v17, %s1338_s1 }
0x14f4   :  { %831 = vrot.lane.b32.xlu1 %v810_v14, %s1338_s1 }
0x155e   :  { %v799_v7 = vpop.permute.xlu1 %798 }
0x155f   :  { %v801_v9 = vadd.f32 %v799_v7, %v791_v2 }
0x1561   :  { %1200 = vtanh.f32 %v801_v9 }
0x1562   :  { %v828_v10 = vpop.permute.xlu1 %827 }
0x1563   :  { %1105 = vmatprep.mubr.msk.bf16.mxu0 %vm221_vm3, %v828_v10 }
0x1566   :  { %v832_v16 = vpop.permute.xlu1 %831 }
0x156b   :  { %v1201_v44 = vpop.eup %1200 }
0x156c   :  { %804 = vrot.lane.b32.xlu0 %v1201_v44, %s1345_s3 }
0x1570   :  { %829 = vrot.lane.b32.xlu0 %v809_v0, %s1338_s1 }
0x15de   :  { %v805_v6 = vpop.permute.xlu0 %804 }
0x15df   :  { %v807_v11 = vmul.f32 %v1199_v61, %v805_v6 }
0x15e1   :  { %v811_v13 = vpack.c.bf16 %v807_v11, %v733_v49 }
0x15e2   :  { %v830_v15 = vpop.permute.xlu0 %829 }
0x15e3   :  { %833 = vrot.lane.b32.xlu0 %v811_v13, %s1338_s1  ;;  %1106 = vmatmul.mubr.msk.bf16.vlgmr.msra.gmra.mrb[16].mxu0 %vm221_vm3, %v830_v15  ;;  %s945_s1 = sshll.u32 %s1346_s5, 4  ;;  %s946_s1 = int_to_ptr.vmem [resolvable:$true] %s945_s1 }
0x15e4   :  { %1109 = vmatprep.mubr.msk.bf16.mxu0 %vm221_vm3, %v832_v16  ;;  %s1306_s23 = scalar_lea.vmem %s946_s1, 1024  ;;  %p1311_p5 = scmp.lt.s32.totalorder %s946_s1, %s946_s1 }
0x15e5   :  { %p1307_p4 = scmp.ne.s32.totalorder %s946_s1, %s1306_s23  ;;  %p1312_p6 = scmp.lt.s32.totalorder %s1306_s23, %s1306_s23 }
0x15e7   :  { %p1313_p7 = por %p1312_p6, %p1311_p5 }
0x15e9   :  { %p1314_p8 = pnand %p1313_p7, %p1307_p4 }
0x1655   :  { %v834_v19 = vpop.permute.xlu0 %833 }
0x1656   :  { %1110 = vmatmul.mubr.msk.bf16.gmra.mrb[20].mxu0 %vm221_vm3, %v834_v19 }
0x16b6   :  { %v1107_v48 = vpop.f32.mrb[16].mxu0 }
0x16b7   :  { %v902_v20 = vadd.f32 %v1107_v48, %v985_v28  ;;  %v893_v5 = vpop.f32.mrb[17].mxu0 }
0x16b8   :  { %v894_v22 = vadd.f32 %v985_v28, %v893_v5  ;;  %v1108_v23 = vpop.f32.mrb[18].mxu0 }
0x16b9   :  { %1202 = vtanh.f32 %v902_v20  ;;  %v905_v25 = vadd.f32 %v1108_v23, %v985_v28  ;;  %v896_v4 = vpop.f32.mrb[19].mxu0 }
0x16ba   :  { %1204 = vtanh.f32 %v894_v22  ;;  %v897_v8 = vadd.f32 %v985_v28, %v896_v4 }
0x16bb   :  { %1206 = vtanh.f32 %v905_v25 }
0x16bc   :  { %1208 = vtanh.f32 %v897_v8 }
0x16c3   :  { %v1203_v18 = vpop.eup %1202 }
0x16c4   :  { %v1205_v21 = vpop.eup %1204  ;;  %934 = vst [vmem:[#allocation11 + $0x10] sm:$0xff] %v1203_v18 }
0x16c5   :  { %v1207_v26 = vpop.eup %1206  ;;  %932 = vst [vmem:[#allocation11] sm:$0xff] %v1205_v21 }
0x16c6   :  { %v1209_v27 = vpop.eup %1208  ;;  %935 = vst [vmem:[#allocation11 + $0x18] sm:$0xff] %v1207_v26 }
0x16c7   :  { %933 = vst [vmem:[#allocation11 + $0x8] sm:$0xff] %v1209_v27 }
0x1729   :  { %v1111_v29 = vpop.f32.mrb[20].mxu0 }
0x172a   :  { %v918_v30 = vadd.f32 %v1111_v29, %v985_v28  ;;  %v909_v31 = vpop.f32.mrb[21].mxu0 }
0x172b   :  { %v910_v32 = vadd.f32 %v985_v28, %v909_v31  ;;  %v1112_v33 = vpop.f32.mrb[22].mxu0 }
0x172c   :  { %1210 = vtanh.f32 %v918_v30  ;;  %v921_v34 = vadd.f32 %v1112_v33, %v985_v28  ;;  %v912_v35 = vpop.f32.mrb[23].mxu0 }
0x172d   :  { %1212 = vtanh.f32 %v910_v32  ;;  %v913_v36 = vadd.f32 %v985_v28, %v912_v35 }
0x172e   :  { %1214 = vtanh.f32 %v921_v34 }
0x172f   :  { %1216 = vtanh.f32 %v913_v36 }
0x1736   :  { %v1211_v37 = vpop.eup %1210 }
0x1737   :  { %v1213_v38 = vpop.eup %1212  ;;  %938 = vst [vmem:[#allocation11 + $0x30] sm:$0xff] %v1211_v37 }
0x1738   :  { %v1215_v39 = vpop.eup %1214  ;;  %936 = vst [vmem:[#allocation11 + $0x20] sm:$0xff] %v1213_v38 }
0x1739   :  { %v1217_v40 = vpop.eup %1216  ;;  %939 = vst [vmem:[#allocation11 + $0x38] sm:$0xff] %v1215_v39 }
0x173a   :  { %937 = vst [vmem:[#allocation11 + $0x28] sm:$0xff] %v1217_v40 }
0x173b   :  { %1317 = shalt.err (!%p1314_p8)
}
0x173c   :  { %s1318_s27 = scalar_lea.hbm %s1624_s6, 1024 }
0x173d   :  { %p1319_p9 = scmp.ne.s32.totalorder %s1624_s6, %s1318_s27  ;;  %p1322_p10 = scmp.lt.u32.totalorder %s1318_s27, %s1624_s6 }
0x173f   :  { %p1324_p11 = pnand %p1322_p10, %p1319_p9 }
0x1741   :  { %1327 = shalt.err (!%p1324_p11)
}
0x1742   :  { %s1347_s8 = smov 128   ;;  %s1348_s9 = smov 8  }
0x1743   :  { %951 = dma.vmem_to_hbm [thread:$0]  %s946_s1, 1024, %s1624_s6, [#allocation5], %s1347_s8, %s1347_s8, %s1348_s9  }
0x1744   :  { %1334 = dma.done.wait [#allocation5], 1024  }
0x1745   :  { %1335 = vsyncadd [#allocation5], 4294966272 }
0x1746   :  { %955 = vsyncpa [#allocation4], 1 }
0x1747   :  { %956 = vsyncpa [#allocation7], 1 }
0x1748   :  { %957 = vsyncpa [#allocation10], 1 }
0x1749   :  { %958 = vsyncpa [#allocation5], 1 }

</bundles_post_ra>
